<compile_context>
chip_gen: v7x
topology: tpu7x:2x2x1
jax: 0.10.0
libtpu: 0.0.40
codegen_flags: <defaults>
</compile_context>

<pallas_src>
import functools

import jax
import jax.numpy as jnp
from jax import lax
from jax.experimental import pallas as pl
from jax.experimental.pallas import tpu as pltpu

LEN_FEATURES = 16   # stand-in for len(feature_names) from the original script
H1 = 280
H2 = 560
N_CLASSES = 2


def _sigmoid(z):
    # sigmoid(z) = 0.5*(tanh(z/2)+1): halves EUP pushes vs exp + reciprocal;
    # the mul/add ride under-used VALU slots.  Output is in [0,1] by range.
    return 0.5 * (jnp.tanh(0.5 * z) + 1.0)


def _mlp_kernel(x_ref, w1_ref, b1_ref, w2_ref, b2_ref, w3d_ref, b3d_ref, o_ref,
                *, ew_dtype):
    # linear1 + sigmoid1 (bf16 MXU inputs, f32 accumulate, elementwise in ew_dtype)
    z1 = jnp.dot(x_ref[...], w1_ref[...],
                 preferred_element_type=jnp.float32) + b1_ref[...]
    h1 = _sigmoid(z1.astype(ew_dtype))                                  # (TB, 280)

    # linear2 + sigmoid2
    z2 = jnp.dot(h1.astype(jnp.bfloat16), w2_ref[...],
                 preferred_element_type=jnp.float32) + b2_ref[...]
    h2 = _sigmoid(z2.astype(ew_dtype))                                  # (TB, 560)

    # Folded 2-class head: softmax([l0, l1])[1] == sigmoid(l1 - l0); the
    # wrapper pre-folded w3d = w3[:,1]-w3[:,0], b3d = b3[1]-b3[0], so this is a
    # single (TB, 1) matmul + sigmoid with no in-kernel lane slicing.
    z3 = jnp.dot(h2.astype(jnp.bfloat16), w3d_ref[...],
                 preferred_element_type=jnp.float32) + b3d_ref[...]     # (TB, 1)
    p1 = jnp.clip(_sigmoid(z3), 0.0, 1.0)                               # f32 head

    # Single store of the whole (TB, 2) output tile: lane 0 <- 1-p1, lane 1 <- p1.
    lane = lax.broadcasted_iota(jnp.int32, (o_ref.shape[0], N_CLASSES), 1)
    o_ref[...] = jnp.where(lane == 0, 1.0 - p1, p1)


def _round_up(x, m):
    return ((x + m - 1) // m) * m


def _default_elementwise_dtype():
    # bf16 VPU/EUP exist on v6e / v7x; v5e (and unknown generations) fall back
    # to f32 elementwise math, which is always correct.
    try:
        kind = jax.devices()[0].device_kind.lower()
    except Exception:
        return jnp.float32
    if any(tag in kind for tag in ("v6", "v7", "tpu7", "trillium")):
        return jnp.bfloat16
    return jnp.float32


def _pick_tile_b(B, tile_b):
    padded_b = _round_up(B, 8)
    tb = max(8, _round_up(min(tile_b, padded_b), 8))
    # Keep >= ~4 grid steps where the batch allows it so v7x's second
    # TensorCore gets work; harmless (still >= 1 step) on v5e/v6e.
    tb = min(tb, max(8, _round_up(max(padded_b // 4, 1), 8)))
    # Shrink to a multiple of 8 that divides padded_b: avoids tile-sized
    # padding and the extra HBM round-trip of jnp.pad(x) / out[:B].
    while padded_b % tb != 0:
        tb -= 8
    return padded_b, tb


def obesity_model_forward(x, params, *, tile_b=512, elementwise_dtype=None):
    """x: (B, LEN_FEATURES) f32. params: dict of transposed f32 weights/biases.

    Streams the batch in tile_b-row tiles while the weights stay VMEM-resident.
    Even at tile_b=512 the working set is ~2-3 MB, far under the 32 MiB scoped
    VMEM budget on every generation (incl. v7x's 64 MiB chip).
    """
    B, F = x.shape
    assert F == LEN_FEATURES

    if elementwise_dtype is None:
        elementwise_dtype = _default_elementwise_dtype()

    padded_b, tile_b = _pick_tile_b(B, tile_b)

    # Cast x to bf16 once in the wrapper (halves the per-tile x DMA, drops the
    # in-kernel cast); pad at most 7 rows to an 8-sublane multiple.
    x = x.astype(jnp.bfloat16)
    if padded_b != B:
        x = jnp.pad(x, ((0, padded_b - B), (0, 0)))
    grid = (padded_b // tile_b,)

    # bf16 weights: halves the one-time weight DMA and feeds the MXU natively.
    w1 = params["w1"].astype(jnp.bfloat16)                               # (16, 280)
    w2 = params["w2"].astype(jnp.bfloat16)                               # (280, 560)
    b1, b2 = params["b1"], params["b2"]                                  # f32 (1, H)
    # Fold the 2-class softmax head into a single logit-difference column.
    w3d = (params["w3"][:, 1:2] - params["w3"][:, 0:1]).astype(jnp.bfloat16)  # (560, 1)
    b3d = params["b3"][:, 1:2] - params["b3"][:, 0:1]                    # (1, 1) f32

    kernel = functools.partial(_mlp_kernel, ew_dtype=elementwise_dtype)

    out = pl.pallas_call(
        kernel,
        out_shape=jax.ShapeDtypeStruct((padded_b, N_CLASSES), jnp.float32),
        grid_spec=pltpu.PrefetchScalarGridSpec(
            num_scalar_prefetch=0,
            grid=grid,
            in_specs=[
                pl.BlockSpec((tile_b, F), lambda i: (i, 0)),             # x: streamed
                pl.BlockSpec((F, H1), lambda i: (0, 0)),                 # weights: resident
                pl.BlockSpec((1, H1), lambda i: (0, 0)),
                pl.BlockSpec((H1, H2), lambda i: (0, 0)),
                pl.BlockSpec((1, H2), lambda i: (0, 0)),
                pl.BlockSpec((H2, 1), lambda i: (0, 0)),
                pl.BlockSpec((1, 1), lambda i: (0, 0)),
            ],
            out_specs=pl.BlockSpec((tile_b, N_CLASSES), lambda i: (i, 0)),
        ),
        compiler_params=pltpu.CompilerParams(
            dimension_semantics=("parallel",),                           # 2-TC split on v7x
        ),
    )(x, w1, b1, w2, b2, w3d, b3d)
    return out[:B] if padded_b != B else out


def init_params(key):
    """Deterministic init mimicking PyTorch Linear default U[-1/sqrt(fan_in), +1/sqrt(fan_in)].
    Weights are stored as (in, out), i.e. the transpose of nn.Linear.weight."""
    ks = jax.random.split(key, 6)

    def lin(kw, kb, fan_in, fan_out):
        bound = 1.0 / jnp.sqrt(fan_in)
        w = jax.random.uniform(kw, (fan_in, fan_out), jnp.float32, -bound, bound)
        b = jax.random.uniform(kb, (1, fan_out), jnp.float32, -bound, bound)
        return w, b

    w1, b1 = lin(ks[0], ks[1], LEN_FEATURES, H1)
    w2, b2 = lin(ks[2], ks[3], H1, H2)
    w3, b3 = lin(ks[4], ks[5], H2, N_CLASSES)
    return {"w1": w1, "b1": b1, "w2": w2, "b2": b2, "w3": w3, "b3": b3}


def _reference_forward(x, p):
    """Pure-JAX f32 reference matching the PyTorch module exactly."""
    h1 = jax.nn.sigmoid(x @ p["w1"] + p["b1"])
    h2 = jax.nn.sigmoid(h1 @ p["w2"] + p["b2"])
    return jax.nn.softmax(h2 @ p["w3"] + p["b3"], axis=1)


if __name__ == "__main__":
    key = jax.random.PRNGKey(0)
    k_params, k_x = jax.random.split(key)

    params = init_params(k_params)
    B = 16
    x = jax.random.normal(k_x, (B, LEN_FEATURES), jnp.float32)

    # tile_b auto-clamps to 8 here -> grid=(2,): exercises the streaming batch
    # grid with VMEM-resident weights.
    out = obesity_model_forward(x, params)
    out = jax.block_until_ready(out)

    ref = _reference_forward(x, params)
    assert out.shape == (B, N_CLASSES)
    # bf16 MXU inputs (+ bf16 elementwise on v6e/v7x) vs f32 reference.
    assert jnp.allclose(out, ref, atol=2e-2, rtol=2e-2)
    # sigmoid-of-difference head sums to 1 by construction.
    assert jnp.allclose(jnp.sum(out, axis=1), 1.0, atol=1e-5)
    assert bool(jnp.all((out >= 0.0) & (out <= 1.0)))

    print("KERNEL_OK")
</pallas_src>

<mosaic_0001>
module attributes {stable_mosaic.version = 11 : i64} {
  func.func @_mlp_kernel(%arg0: i32, %arg1: memref<8x16xbf16, #tpu.memory_space<vmem>>, %arg2: memref<16x280xbf16, #tpu.memory_space<vmem>>, %arg3: memref<1x280xf32, #tpu.memory_space<vmem>>, %arg4: memref<280x560xbf16, #tpu.memory_space<vmem>>, %arg5: memref<1x560xf32, #tpu.memory_space<vmem>>, %arg6: memref<560x1xbf16, #tpu.memory_space<vmem>>, %arg7: memref<1x1xf32, #tpu.memory_space<vmem>>, %arg8: memref<8x2xf32, #tpu.memory_space<vmem>>) attributes {dimension_semantics = [#tpu.dimension_semantics<parallel>], iteration_bounds = array<i64: 2>, scalar_prefetch = 0 : i64, scratch_operands = 0 : i64, tpu.core_type = #tpu.core_type<tc>, window_params = [{transform_indices = @transform_0, window_bounds = array<i64: 8, 16>}, {pipeline_mode = #tpu.pipeline_mode<synchronous>, transform_indices = @transform_1, window_bounds = array<i64: 16, 280>}, {pipeline_mode = #tpu.pipeline_mode<synchronous>, transform_indices = @transform_2, window_bounds = array<i64: 1, 280>}, {pipeline_mode = #tpu.pipeline_mode<synchronous>, transform_indices = @transform_3, window_bounds = array<i64: 280, 560>}, {pipeline_mode = #tpu.pipeline_mode<synchronous>, transform_indices = @transform_4, window_bounds = array<i64: 1, 560>}, {pipeline_mode = #tpu.pipeline_mode<synchronous>, transform_indices = @transform_5, window_bounds = array<i64: 560, 1>}, {pipeline_mode = #tpu.pipeline_mode<synchronous>, transform_indices = @transform_6, window_bounds = array<i64: 1, 1>}, {transform_indices = @transform_7, window_bounds = array<i64: 8, 2>}]} {
    %c0 = arith.constant 0 : index
    %c0_0 = arith.constant 0 : index
    %0 = vector.load %arg1[%c0, %c0_0] : memref<8x16xbf16, #tpu.memory_space<vmem>>, vector<8x16xbf16>
    %c0_1 = arith.constant 0 : index
    %c0_2 = arith.constant 0 : index
    %1 = vector.load %arg2[%c0_1, %c0_2] : memref<16x280xbf16, #tpu.memory_space<vmem>>, vector<16x280xbf16>
    %cst = arith.constant dense<0.000000e+00> : vector<8x280xf32>
    %2 = tpu.matmul %0, %1, %cst {dimension_numbers = #tpu.dot_dimension_numbers<[1], [0], [0], [1], [0, 0, 1, 1], [], []>} : vector<8x16xbf16>, vector<16x280xbf16>, vector<8x280xf32> -> vector<8x280xf32>
    %c0_3 = arith.constant 0 : index
    %c0_4 = arith.constant 0 : index
    %3 = vector.load %arg3[%c0_3, %c0_4] : memref<1x280xf32, #tpu.memory_space<vmem>>, vector<1x280xf32>
    %4 = vector.broadcast %3 : vector<1x280xf32> to vector<8x280xf32>
    %5 = arith.addf %2, %4 : vector<8x280xf32>
    %cst_5 = arith.constant 5.000000e-01 : f32
    %6 = vector.broadcast %cst_5 : f32 to vector<8x280xf32>
    %7 = arith.mulf %6, %5 : vector<8x280xf32>
    %8 = math.tanh %7 : vector<8x280xf32>
    %cst_6 = arith.constant 1.000000e+00 : f32
    %9 = vector.broadcast %cst_6 : f32 to vector<8x280xf32>
    %10 = arith.addf %8, %9 : vector<8x280xf32>
    %cst_7 = arith.constant 5.000000e-01 : f32
    %11 = vector.broadcast %cst_7 : f32 to vector<8x280xf32>
    %12 = arith.mulf %11, %10 : vector<8x280xf32>
    %13 = arith.truncf %12 : vector<8x280xf32> to vector<8x280xbf16>
    %c0_8 = arith.constant 0 : index
    %c0_9 = arith.constant 0 : index
    %14 = vector.load %arg4[%c0_8, %c0_9] : memref<280x560xbf16, #tpu.memory_space<vmem>>, vector<280x560xbf16>
    %cst_10 = arith.constant dense<0.000000e+00> : vector<8x560xf32>
    %15 = tpu.matmul %13, %14, %cst_10 {dimension_numbers = #tpu.dot_dimension_numbers<[1], [0], [0], [1], [0, 0, 1, 1], [], []>} : vector<8x280xbf16>, vector<280x560xbf16>, vector<8x560xf32> -> vector<8x560xf32>
    %c0_11 = arith.constant 0 : index
    %c0_12 = arith.constant 0 : index
    %16 = vector.load %arg5[%c0_11, %c0_12] : memref<1x560xf32, #tpu.memory_space<vmem>>, vector<1x560xf32>
    %17 = vector.broadcast %16 : vector<1x560xf32> to vector<8x560xf32>
    %18 = arith.addf %15, %17 : vector<8x560xf32>
    %cst_13 = arith.constant 5.000000e-01 : f32
    %19 = vector.broadcast %cst_13 : f32 to vector<8x560xf32>
    %20 = arith.mulf %19, %18 : vector<8x560xf32>
    %21 = math.tanh %20 : vector<8x560xf32>
    %cst_14 = arith.constant 1.000000e+00 : f32
    %22 = vector.broadcast %cst_14 : f32 to vector<8x560xf32>
    %23 = arith.addf %21, %22 : vector<8x560xf32>
    %cst_15 = arith.constant 5.000000e-01 : f32
    %24 = vector.broadcast %cst_15 : f32 to vector<8x560xf32>
    %25 = arith.mulf %24, %23 : vector<8x560xf32>
    %26 = arith.truncf %25 : vector<8x560xf32> to vector<8x560xbf16>
    %c0_16 = arith.constant 0 : index
    %c0_17 = arith.constant 0 : index
    %27 = vector.load %arg6[%c0_16, %c0_17] : memref<560x1xbf16, #tpu.memory_space<vmem>>, vector<560x1xbf16>
    %cst_18 = arith.constant dense<0.000000e+00> : vector<8x1xf32>
    %28 = tpu.matmul %26, %27, %cst_18 {dimension_numbers = #tpu.dot_dimension_numbers<[1], [0], [0], [1], [0, 0, 1, 1], [], []>} : vector<8x560xbf16>, vector<560x1xbf16>, vector<8x1xf32> -> vector<8x1xf32>
    %c0_19 = arith.constant 0 : index
    %c0_20 = arith.constant 0 : index
    %29 = vector.load %arg7[%c0_19, %c0_20] : memref<1x1xf32, #tpu.memory_space<vmem>>, vector<1x1xf32>
    %30 = vector.broadcast %29 : vector<1x1xf32> to vector<8x1xf32>
    %31 = arith.addf %28, %30 : vector<8x1xf32>
    %cst_21 = arith.constant 5.000000e-01 : f32
    %32 = vector.broadcast %cst_21 : f32 to vector<8x1xf32>
    %33 = arith.mulf %32, %31 : vector<8x1xf32>
    %34 = math.tanh %33 : vector<8x1xf32>
    %cst_22 = arith.constant 1.000000e+00 : f32
    %35 = vector.broadcast %cst_22 : f32 to vector<8x1xf32>
    %36 = arith.addf %34, %35 : vector<8x1xf32>
    %cst_23 = arith.constant 5.000000e-01 : f32
    %37 = vector.broadcast %cst_23 : f32 to vector<8x1xf32>
    %38 = arith.mulf %37, %36 : vector<8x1xf32>
    %cst_24 = arith.constant 0.000000e+00 : f32
    %cst_25 = arith.constant 1.000000e+00 : f32
    %39 = vector.broadcast %cst_24 : f32 to vector<8x1xf32>
    %40 = arith.maximumf %39, %38 : vector<8x1xf32>
    %41 = vector.broadcast %cst_25 : f32 to vector<8x1xf32>
    %42 = arith.minimumf %41, %40 : vector<8x1xf32>
    %43 = tpu.iota {dimensions = array<i32: 1>} : vector<8x2xi32>
    %c0_i32 = arith.constant 0 : i32
    %44 = vector.broadcast %c0_i32 : i32 to vector<8x2xi32>
    %45 = arith.cmpi eq, %43, %44 : vector<8x2xi32>
    %cst_26 = arith.constant 1.000000e+00 : f32
    %46 = vector.broadcast %cst_26 : f32 to vector<8x1xf32>
    %47 = arith.subf %46, %42 : vector<8x1xf32>
    %48 = vector.shape_cast %47 : vector<8x1xf32> to vector<8x1xf32>
    %49 = vector.broadcast %48 : vector<8x1xf32> to vector<8x2xf32>
    %50 = vector.shape_cast %42 : vector<8x1xf32> to vector<8x1xf32>
    %51 = vector.broadcast %50 : vector<8x1xf32> to vector<8x2xf32>
    %52 = arith.select %45, %49, %51 : vector<8x2xi1>, vector<8x2xf32>
    %c0_27 = arith.constant 0 : index
    %c0_28 = arith.constant 0 : index
    %53 = vector.load %arg8[%c0_27, %c0_28] : memref<8x2xf32, #tpu.memory_space<vmem>>, vector<8x2xf32>
    tpu.vector_store %arg8[%c0_27, %c0_28], %52 {strides = array<i32>} : memref<8x2xf32, #tpu.memory_space<vmem>>, vector<8x2xf32>,
    return
  }
  func.func @transform_0(%arg0: i32) -> (i32, i32) {
    %c0_i32 = arith.constant 0 : i32
    %c0_i32_0 = arith.constant 0 : i32
    return %arg0, %c0_i32 : i32, i32
  }
  func.func @transform_1(%arg0: i32) -> (i32, i32) {
    %c0_i32 = arith.constant 0 : i32
    %c0_i32_0 = arith.constant 0 : i32
    %c0_i32_1 = arith.constant 0 : i32
    return %c0_i32, %c0_i32_0 : i32, i32
  }
  func.func @transform_2(%arg0: i32) -> (i32, i32) {
    %c0_i32 = arith.constant 0 : i32
    %c0_i32_0 = arith.constant 0 : i32
    %c0_i32_1 = arith.constant 0 : i32
    return %c0_i32, %c0_i32_0 : i32, i32
  }
  func.func @transform_3(%arg0: i32) -> (i32, i32) {
    %c0_i32 = arith.constant 0 : i32
    %c0_i32_0 = arith.constant 0 : i32
    %c0_i32_1 = arith.constant 0 : i32
    return %c0_i32, %c0_i32_0 : i32, i32
  }
  func.func @transform_4(%arg0: i32) -> (i32, i32) {
    %c0_i32 = arith.constant 0 : i32
    %c0_i32_0 = arith.constant 0 : i32
    %c0_i32_1 = arith.constant 0 : i32
    return %c0_i32, %c0_i32_0 : i32, i32
  }
  func.func @transform_5(%arg0: i32) -> (i32, i32) {
    %c0_i32 = arith.constant 0 : i32
    %c0_i32_0 = arith.constant 0 : i32
    %c0_i32_1 = arith.constant 0 : i32
    return %c0_i32, %c0_i32_0 : i32, i32
  }
  func.func @transform_6(%arg0: i32) -> (i32, i32) {
    %c0_i32 = arith.constant 0 : i32
    %c0_i32_0 = arith.constant 0 : i32
    %c0_i32_1 = arith.constant 0 : i32
    return %c0_i32, %c0_i32_0 : i32, i32
  }
  func.func @transform_7(%arg0: i32) -> (i32, i32) {
    %c0_i32 = arith.constant 0 : i32
    %c0_i32_0 = arith.constant 0 : i32
    return %arg0, %c0_i32 : i32, i32
  }
}

</mosaic_0001>

<bundles_post_ra>
// kernel: tpu_custom_call.1
= control target key start
LH: loop header
LB: loop body
LE: loop exit
PB: predicated region body
PF: predicated region fallthrough
CT: control target
= control target key end

     0   :  { %s2591_s0 = inlined_call_operand.vmem [shape: bf16[16,16], index: 0, kind: input, shape index: {}]   ;;  %s2592_s1 = inlined_call_operand.vmem [shape: bf16[16,280], index: 1, kind: input, shape index: {}]   ;;  %s2593_s2 = inlined_call_operand.vmem [shape: f32[1,280], index: 2, kind: input, shape index: {}]   ;;  %s2594_s3 = inlined_call_operand.hbm [shape: bf16[280,560], index: 3, kind: input, shape index: {}]   ;;  %s2595_s4 = inlined_call_operand.vmem [shape: f32[1,560], index: 4, kind: input, shape index: {}]   ;;  %s2596_s5 = inlined_call_operand.vmem [shape: bf16[560,1], index: 5, kind: input, shape index: {}]   ;;  %s2597_s6 = inlined_call_operand.<no memory space> [shape: f32[1,1], index: 6, kind: input, shape index: {}]   ;;  %s2598_s7 = inlined_call_operand.vmem [shape: f32[16,2], index: 7, kind: output, shape index: {}]  }
   0x1   :  { %v12_v0 = vstv %s2597_s6 }
   0x2   :  { %13 = vst [vmem:[#allocation2] sm:$0x1] %v12_v0 }
   0x3   :  { %14 = vsyncpa [#allocation4], 0  ;;  %s2359_s26 = smov 0  }
   0x4 LB: > { %s2365_s27 = sadd.s32 4294967295, %s2308_s26   ;;  %p1807_p0 = scmp.ge.s32.totalorder %s2308_s26, 1  ;;  %s2308_s26 = sphi %s2359_s26, %s20_s26  }
   0x5   : > { %p203_p1 = scmp.lt.s32.totalorder %s2308_s26, 3  ;;  %s2310_s28 = smov [#allocation3]  }
   0x6   : > { %s221_s6 = sshll.u32 %s2310_s28, 4  ;;  %p2599_p3 = scmp.eq.s32.totalorder %s2365_s27, 0  ;;  %s222_s6 = int_to_ptr.vmem [resolvable:$true] %s221_s6 }
   0x7   : > { %p2369_p2 = pnand %p1807_p0, %p203_p1  ;;  %s2270_s10 = scalar_lea.hbm %s2594_s3, 11200 }
   0x8   : > { %p2271_p6 = scmp.ne.s32.totalorder %s2594_s3, %s2270_s10  ;;  %p2277_p10 = scmp.lt.u32.totalorder %s2270_s10, %s2594_s3 }
   0x9   : > { %s2601_s29 = scalar_select %p2369_p2, 1, 0 }
   0xa   : > { %p2068_p4 = pneg %p2369_p2 }
   0xc   : > { %p2378_p5 = pnand %p2599_p3, %p2068_p4 }
   0xe   : > { %p2272_p7 = pneg %p2378_p5 }
  0x10   : > { %p2273_p8 = pnand %p2272_p7, %p2271_p6 }
  0x12   : > { %p2274_p9 = pneg %p2273_p8 }
  0x14   : > { %p2279_p11 = pnand %p2277_p10, %p2274_p9 }
  0x16   : > { %2282 = shalt.err (!%p2279_p11)
}
  0x17   : > { %s2283_s15 = scalar_lea.vmem %s222_s6, 11200  ;;  %p2291_p1 = scmp.lt.s32.totalorder %s222_s6, %s222_s6 }
  0x18   : > { %p2284_p12 = scmp.ne.s32.totalorder %s222_s6, %s2283_s15  ;;  %p2292_p4 = scmp.lt.s32.totalorder %s2283_s15, %s2283_s15 }
  0x1a   : > { %p2286_p13 = pnand %p2284_p12, %p2272_p7  ;;  %p2293_p3 = por %p2292_p4, %p2291_p1 }
  0x1c   : > { %p2287_p0 = pneg %p2286_p13 }
  0x1e   : > { %p2294_p2 = pnand %p2293_p3, %p2287_p0 }
  0x20   : > { %2297 = shalt.err (!%p2294_p2)
}
  0x21   : > { %s2311_s16 = smov 320   ;;  %s2312_s17 = smov 20  }
  0x22   : > { %2071 = dma.hbm_to_vmem [thread:$0]  (!%p2378_p5), %s2594_s3, 11200, %s222_s6, [#allocation4], %s2311_s16, %s2311_s16, %s2312_s17  }
  0x23   : > { %p2603_p6 = scmp.ne.s32.totalorder %s2601_s29, 0 }
  0x24   : > { %p2604_p8 = scmp.eq.s32.totalorder (!%p2603_p6), %s2365_s27, 0 }
  0x25   : > { %253 = sbr.rel (%p2603_p6) target bundleno = 939 (0x3ab), region = 48 }
  0x2c   : > { %2303 = dma.done.wait (%p2604_p8), [#allocation4], 11200   ;;  %p2605_p7 = pmov %p2604_p8 }
  0x2d   : > { %p283_p2 = scmp.lt.s32.totalorder %s2365_s27, 1  ;;  %v2313_v1 = vmov 0   ;;  %v2089_v2 = vld [vmem:[%s2592_s1 + $0x4] ss:$12 sps:$4 sm:$0xff]   ;;  %v2091_v3 = vld [vmem:[%s2592_s1] ss:$12 sps:$4 sm:$0xff]  }
  0x2e   : > { %2305 = vsyncadd (%p2605_p7), [#allocation4], 4294956096  ;;  %366 = vmatprep.mubr.bf16.mxu1 %v2313_v1  ;;  %2088 = vset.pattern.permute.xlu0 %v2313_v1  ;;  %v2092_v5 = vld [vmem:[%s2592_s1 + $0x8] ss:$12 sps:$4 sm:$0xff]   ;;  %vm330_vm0 = vcmask 130048   ;;  %v2314_v8 = vmov 0.0  }
  0x2f   : > { %s2607_s27 = smov (!%p283_p2, %s2365_s27), 1  ;;  %334 = vmatprep.subr.bf16.mxu1 %v2089_v2  ;;  %v2093_v6 = vld [vmem:[#allocation3 + $0x4] ss:$20 sps:$4 sm:$0xff]   ;;  %v2095_v7 = vld [vmem:[#allocation3] ss:$20 sps:$4 sm:$0xff]   ;;  %vm2315_vm1 = vmmov 0  }
  0x30   : > { %s1812_s20 = sshll.u32 %s2607_s27, 2  ;;  %335 = vmatpush1.bf16.msra.mxu1 %v2091_v3  ;;  %1037 = vmatprep.subr.bf16.mxu0 %v2093_v6  ;;  %v2098_v9 = vld [vmem:[#allocation3 + $0xc] ss:$20 sps:$4 sm:$0xff]   ;;  %v2101_v11 = vld [vmem:[#allocation3 + $0x28] ss:$20 sps:$4 sm:$0xff]   ;;  %vm1021_vm2 = vcmask 1043456  }
  0x31   : > { %s286_s23 = scalar_lea.vmem %s2591_s0, %s1812_s20  ;;  %2028 = vmatprep.subr.bf16.mxu1 %v2314_v8  ;;  %1038 = vmatpush1.bf16.msra.mxu0 %v2095_v7  ;;  %v2099_v10 = vld [vmem:[#allocation3 + $0x2c] ss:$20 sps:$4 sm:$0xff]   ;;  %v2105_v12 = vld [vmem:[#allocation3 + $0x54] ss:$20 sps:$4 sm:$0xff]   ;;  %v2107_v13 = vld [vmem:[#allocation3 + $0x50] ss:$20 sps:$4 sm:$0xff]  }
  0x32   : > { %v292_v4 = vld [vmem:[%s286_s23] sm:$0xf]  ;;  %1039 = vmatprep.subr.bf16.mxu0 %v2099_v10  ;;  %v2104_v16 = vld [vmem:[#allocation3 + $0x34] ss:$20 sps:$4 sm:$0xff]   ;;  %v2113_v17 = vld [vmem:[#allocation3 + $0x78] ss:$20 sps:$4 sm:$0xff]  }
  0x33   : > { %1817 = vmatmul.mubr.msk.bf16.vlgmr.msra.gmra.mrb[0].mxu1 %vm330_vm0, %v292_v4  ;;  %v2096_v14 = vld [vmem:[#allocation3 + $0x8] ss:$20 sps:$4 sm:$0xff]   ;;  %v2102_v18 = vld [vmem:[#allocation3 + $0x30] ss:$20 sps:$4 sm:$0xff]   ;;  %v2119_v21 = vld [vmem:[#allocation3 + $0xa0] ss:$20 sps:$4 sm:$0xff]  }
  0x34   : > { %2029 = vmatpush3.bf16.msra.mxu1 %v2092_v5  ;;  %2030 = vmatprep.mubr.msk.bf16.mxu1 %vm2315_vm1, %v2314_v8  ;;  %v2111_v15 = vld [vmem:[#allocation3 + $0x7c] ss:$20 sps:$4 sm:$0xff]   ;;  %v2117_v19 = vld [vmem:[#allocation3 + $0xa4] ss:$20 sps:$4 sm:$0xff]   ;;  %v2123_v23 = vld [vmem:[#allocation3 + $0xcc] ss:$20 sps:$4 sm:$0xff]  }
  0x35   : > { %1119 = vmatprep.subr.bf16.mxu1 %v2098_v9  ;;  %1040 = vmatpush1.bf16.msra.mxu0 %v2101_v11  ;;  %v2110_v20 = vld [vmem:[#allocation3 + $0x5c] ss:$20 sps:$4 sm:$0xff]   ;;  %v2108_v22 = vld [vmem:[#allocation3 + $0x58] ss:$20 sps:$4 sm:$0xff]   ;;  %v2114_v26 = vld [vmem:[#allocation3 + $0x80] ss:$20 sps:$4 sm:$0xff]   ;;  %v299_v11 = vlaneseq }
  0x36   : > { %1041 = vmatprep.subr.bf16.mxu0 %v2105_v12  ;;  %v2116_v24 = vld [vmem:[#allocation3 + $0x84] ss:$20 sps:$4 sm:$0xff]   ;;  %v2125_v25 = vld [vmem:[#allocation3 + $0xc8] ss:$20 sps:$4 sm:$0xff]   ;;  %v2122_v28 = vld [vmem:[#allocation3 + $0xac] ss:$20 sps:$4 sm:$0xff]  }
  0x37   : > { %v2129_v27 = vld [vmem:[#allocation3 + $0xf4] ss:$20 sps:$4 sm:$0xff]   ;;  %v2131_v29 = vld [vmem:[#allocation3 + $0xf0] ss:$20 sps:$4 sm:$0xff]   ;;  %v2137_v35 = vld [vmem:[#allocation3 + $0x118] ss:$20 sps:$4 sm:$0xff]  }
  0x38   : > { %v2120_v30 = vld [vmem:[#allocation3 + $0xa8] ss:$20 sps:$4 sm:$0xff]   ;;  %v2126_v33 = vld [vmem:[#allocation3 + $0xd0] ss:$20 sps:$4 sm:$0xff]   ;;  %v2143_v37 = vld [vmem:[#allocation3 + $0x140] ss:$20 sps:$4 sm:$0xff]  }
  0x39   : > { %1042 = vmatpush1.bf16.msra.mxu0 %v2107_v13  ;;  %v2135_v31 = vld [vmem:[#allocation3 + $0x11c] ss:$20 sps:$4 sm:$0xff]   ;;  %v2128_v32 = vld [vmem:[#allocation3 + $0xd4] ss:$20 sps:$4 sm:$0xff]   ;;  %v2141_v36 = vld [vmem:[#allocation3 + $0x144] ss:$20 sps:$4 sm:$0xff]  }
  0x3a   : > { %1043 = vmatprep.subr.bf16.mxu0 %v2111_v15  ;;  %v2134_v34 = vld [vmem:[#allocation3 + $0xfc] ss:$20 sps:$4 sm:$0xff]   ;;  %v2132_v38 = vld [vmem:[#allocation3 + $0xf8] ss:$20 sps:$4 sm:$0xff]   ;;  %v2138_v42 = vld [vmem:[#allocation3 + $0x120] ss:$20 sps:$4 sm:$0xff]  }
  0x3b   : > { %2031 = vmatmul.mubr.msk.bf16.vlgmr.msra.gmra.mrb[4].mxu1 %vm330_vm0, %v292_v4  ;;  %v2147_v39 = vld [vmem:[#allocation3 + $0x16c] ss:$20 sps:$4 sm:$0xff]   ;;  %v2140_v40 = vld [vmem:[#allocation3 + $0x124] ss:$20 sps:$4 sm:$0xff]   ;;  %v2149_v41 = vld [vmem:[#allocation3 + $0x168] ss:$20 sps:$4 sm:$0xff]  }
  0x3c   : > { %1120 = vmatpush1.bf16.msra.mxu1 %v2096_v14  ;;  %v2153_v43 = vld [vmem:[#allocation3 + $0x194] ss:$20 sps:$4 sm:$0xff]   ;;  %v2146_v44 = vld [vmem:[#allocation3 + $0x14c] ss:$20 sps:$4 sm:$0xff]   ;;  %v2150_v47 = vld [vmem:[#allocation3 + $0x170] ss:$20 sps:$4 sm:$0xff]  }
  0x3d   : > { %1121 = vmatprep.subr.bf16.mxu1 %v2104_v16  ;;  %1044 = vmatpush1.bf16.msra.mxu0 %v2113_v17  ;;  %v2144_v45 = vld [vmem:[#allocation3 + $0x148] ss:$20 sps:$4 sm:$0xff]   ;;  %v2155_v49 = vld [vmem:[#allocation3 + $0x190] ss:$20 sps:$4 sm:$0xff]   ;;  %v2156_v50 = vld [vmem:[#allocation3 + $0x198] ss:$20 sps:$4 sm:$0xff]  }
  0x3e   : > { %1045 = vmatprep.subr.bf16.mxu0 %v2117_v19  ;;  %v2152_v46 = vld [vmem:[#allocation3 + $0x174] ss:$20 sps:$4 sm:$0xff]   ;;  %v2158_v48 = vld [vmem:[#allocation3 + $0x19c] ss:$20 sps:$4 sm:$0xff]   ;;  %v2164_v52 = vld [vmem:[#allocation3 + $0x1c4] ss:$20 sps:$4 sm:$0xff]  }
  0x3f   : > { %v2159_v51 = vld [vmem:[#allocation3 + $0x1bc] ss:$20 sps:$4 sm:$0xff]   ;;  %v2161_v53 = vld [vmem:[#allocation3 + $0x1b8] ss:$20 sps:$4 sm:$0xff]   ;;  %v2162_v54 = vld [vmem:[#allocation3 + $0x1c0] ss:$20 sps:$4 sm:$0xff]  }
  0x40   : > { %1122 = vmatpush1.bf16.msra.mxu1 %v2102_v18  ;;  %v2165_v55 = vld [vmem:[#allocation3 + $0x1e4] ss:$20 sps:$4 sm:$0xff]   ;;  %v2170_v56 = vld [vmem:[#allocation3 + $0x1ec] ss:$20 sps:$4 sm:$0xff]   ;;  %v2168_v58 = vld [vmem:[#allocation3 + $0x1e8] ss:$20 sps:$4 sm:$0xff]  }
  0x41   : > { %1123 = vmatprep.subr.bf16.mxu1 %v2110_v20  ;;  %1046 = vmatpush1.bf16.msra.mxu0 %v2119_v21  ;;  %v2167_v57 = vld [vmem:[#allocation3 + $0x1e0] ss:$20 sps:$4 sm:$0xff]   ;;  %v2173_v61 = vld [vmem:[#allocation3 + $0x208] ss:$20 sps:$4 sm:$0xff]   ;;  %v2174_v62 = vld [vmem:[#allocation3 + $0x210] ss:$20 sps:$4 sm:$0xff]  }
  0x42   : > { %1047 = vmatprep.subr.bf16.mxu0 %v2123_v23  ;;  %v2171_v59 = vld [vmem:[#allocation3 + $0x20c] ss:$20 sps:$4 sm:$0xff]   ;;  %v2176_v60 = vld [vmem:[#allocation3 + $0x214] ss:$20 sps:$4 sm:$0xff]   ;;  %v2182_v0 = vld [vmem:[#allocation3 + $0x23c] ss:$20 sps:$4 sm:$0xff]  }
  0x43   : > { %v2177_v63 = vld [vmem:[#allocation3 + $0x234] ss:$20 sps:$4 sm:$0xff]   ;;  %v2179_v2 = vld [vmem:[#allocation3 + $0x230] ss:$20 sps:$4 sm:$0xff]   ;;  %v2180_v3 = vld [vmem:[#allocation3 + $0x238] ss:$20 sps:$4 sm:$0xff]  }
  0x44   : > { %1124 = vmatpush1.bf16.msra.mxu1 %v2108_v22  ;;  %v2183_v4 = vld [vmem:[#allocation3 + $0x25c] ss:$20 sps:$4 sm:$0xff]   ;;  %v2188_v5 = vld [vmem:[#allocation3 + $0x264] ss:$20 sps:$4 sm:$0xff]   ;;  %v2186_v7 = vld [vmem:[#allocation3 + $0x260] ss:$20 sps:$4 sm:$0xff]  }
  0x45   : > { %1125 = vmatprep.subr.bf16.mxu1 %v2116_v24  ;;  %1048 = vmatpush1.bf16.msra.mxu0 %v2125_v25  ;;  %v2185_v6 = vld [vmem:[#allocation3 + $0x258] ss:$20 sps:$4 sm:$0xff]   ;;  %v2429_v12 = vshrl.u32 %v299_v11, 7  ;;  %v297_v14 = vld [vmem:[%s2593_s2] sm:$0x7]  ;;  %vm1017_vm3 = vcmask 195584  }
  0x46   : > { %1049 = vmatprep.subr.bf16.mxu0 %v2129_v27  ;;  %v2191_v9 = vld [vmem:[#allocation3 + $0x284] ss:$20 sps:$4 sm:$0xff]   ;;  %v2194_v10 = vld [vmem:[#allocation3 + $0x28c] ss:$20 sps:$4 sm:$0xff]   ;;  %vm1593_vm4 = vcmask 392192   ;;  %s1813_s16 = sshll.u32 %s2607_s27, 3 }
  0x47   : > { %v301_v13 = vsub.s32 0, %v2429_v12  ;;  %v305_v15 = vsub.s32 1, %v2429_v12  ;;  %v309_v21 = vsub.s32 2, %v2429_v12  ;;  %s290_s19 = scalar_lea.vmem %s2598_s7, %s1813_s16  ;;  %vm1738_vm6 = vcmask 15360  }
  0x48   : > { %1126 = vmatpush1.bf16.msra.mxu1 %v2114_v26 }
  0x49   : > { %1127 = vmatprep.subr.bf16.mxu1 %v2122_v28  ;;  %1050 = vmatpush1.bf16.msra.mxu0 %v2131_v29  ;;  %v302_v16 = vrot.slane %v297_v14, %v301_v13  ;;  %v306_v17 = vrot.slane %v297_v14, %v305_v15  ;;  %v310_v27 = vrot.slane %v297_v14, %v309_v21  ;;  %v2212_v14 = vld [vmem:[#allocation3 + $0xd8] ss:$20 sps:$4 sm:$0xff]  }
  0x4a   : > { %1051 = vmatprep.subr.bf16.mxu0 %v2135_v31 }
  0x4c   : > { %1128 = vmatpush1.bf16.msra.mxu1 %v2120_v30 }
  0x4d   : > { %1129 = vmatprep.subr.bf16.mxu1 %v2128_v32  ;;  %1052 = vmatpush1.bf16.msra.mxu0 %v2137_v35 }
  0x4e   : > { %1053 = vmatprep.subr.bf16.mxu0 %v2141_v36 }
  0x50   : > { %1130 = vmatpush1.bf16.msra.mxu1 %v2126_v33 }
  0x51   : > { %1131 = vmatprep.subr.bf16.mxu1 %v2134_v34  ;;  %1054 = vmatpush1.bf16.msra.mxu0 %v2143_v37 }
  0x52   : > { %1055 = vmatprep.subr.bf16.mxu0 %v2147_v39  ;;  %v532_v39 = vld [vmem:[#allocation3 + $0x2a8] sm:$0xff] }
  0x54   : > { %1132 = vmatpush1.bf16.msra.mxu1 %v2132_v38 }
  0x55   : > { %1133 = vmatprep.subr.bf16.mxu1 %v2140_v40  ;;  %1056 = vmatpush1.bf16.msra.mxu0 %v2149_v41  ;;  %v533_v41 = vld [vmem:[#allocation3 + $0x2b0] sm:$0xff] }
  0x56   : > { %1057 = vmatprep.subr.bf16.mxu0 %v2153_v43  ;;  %v2189_v43 = vld [vmem:[#allocation3 + $0x280] ss:$20 sps:$4 sm:$0xff]  }
  0x58   : > { %1134 = vmatpush1.bf16.msra.mxu1 %v2138_v42 }
  0x59   : > { %1135 = vmatprep.subr.bf16.mxu1 %v2146_v44  ;;  %1058 = vmatpush1.bf16.msra.mxu0 %v2155_v49  ;;  %v2192_v44 = vld [vmem:[#allocation3 + $0x288] ss:$20 sps:$4 sm:$0xff]   ;;  %v1906_v49 = vcombine.low %v533_v41, %v533_v41 }
  0x5a   : > { %1059 = vmatprep.subr.bf16.mxu0 %v2159_v51 }
  0x5c   : > { %1136 = vmatpush1.bf16.msra.mxu1 %v2144_v45  ;;  %v1905_v45 = vcombine.high %v532_v39, %v532_v39 }
  0x5d   : > { %1137 = vmatprep.subr.bf16.mxu1 %v2152_v46  ;;  %1060 = vmatpush1.bf16.msra.mxu0 %v2161_v53  ;;  %v1029_v53 = vsel %vm1021_vm2, %v1906_v49, 0  ;;  %v535_v49 = vld [vmem:[%s2595_s4] sm:$0x1f] }
  0x5e   : > { %1061 = vmatprep.subr.bf16.mxu0 %v2165_v55 }
  0x60   : > { %1138 = vmatpush1.bf16.msra.mxu1 %v2150_v47  ;;  %v1904_v47 = vcombine.low %v532_v39, %v532_v39  ;;  %v2239_v39 = vld [vmem:[%s2596_s5 + $0x28] sm:$0xff]  }
  0x61   : > { %1139 = vmatprep.subr.bf16.mxu1 %v2158_v48  ;;  %1062 = vmatpush1.bf16.msra.mxu0 %v2167_v57  ;;  %v1907_v48 = vcombine.high %v533_v41, %v533_v41  ;;  %v2200_v57 = vld [vmem:[#allocation3 + $0x10] ss:$20 sps:$4 sm:$0xff]  }
  0x62   : > { %1063 = vmatprep.subr.bf16.mxu0 %v2171_v59  ;;  %v2202_v59 = vld [vmem:[#allocation3 + $0x178] ss:$20 sps:$4 sm:$0xff]  }
  0x63   : > { %v2241_v41 = vld [vmem:[%s2596_s5 + $0x70] sm:$0xff]  }
  0x64   : > { %1140 = vmatpush1.bf16.msra.mxu1 %v2156_v50 }
  0x65   : > { %1141 = vmatprep.subr.bf16.mxu1 %v2164_v52  ;;  %1064 = vmatpush1.bf16.msra.mxu0 %v2173_v61  ;;  %v1023_v52 = vsel %vm1021_vm2, %v1904_v47, 0  ;;  %v2203_v61 = vld [vmem:[#allocation3 + $0x38] ss:$20 sps:$4 sm:$0xff]  }
  0x66   : > { %1065 = vmatprep.subr.bf16.mxu0 %v2177_v63  ;;  %v2217_v63 = vld [vmem:[%s2596_s5 + $0x40] sm:$0xff]   ;;  %v2247_v47 = vld [vmem:[%s2596_s5 + $0x38] sm:$0xff]  }
  0x68   : > { %1142 = vmatpush1.bf16.msra.mxu1 %v2162_v54  ;;  %v2199_v54 = vld [vmem:[#allocation3 + $0x150] ss:$20 sps:$4 sm:$0xff]  }
  0x69   : > { %1143 = vmatprep.subr.bf16.mxu1 %v2170_v56  ;;  %1066 = vmatpush1.bf16.msra.mxu0 %v2179_v2  ;;  %v2207_v2 = vld [vmem:[#allocation3 + $0x1c8] ss:$20 sps:$4 sm:$0xff]  }
  0x6a   : > { %1067 = vmatprep.subr.bf16.mxu0 %v2183_v4  ;;  %v2221_v4 = vld [vmem:[%s2596_s5 + $0x48] sm:$0xff]  }
  0x6c   : > { %1144 = vmatpush1.bf16.msra.mxu1 %v2168_v58  ;;  %v2201_v58 = vld [vmem:[#allocation3 + $0x290] ss:$20 sps:$4 sm:$0xff]  }
  0x6d   : > { %1145 = vmatprep.subr.bf16.mxu1 %v2176_v60  ;;  %1068 = vmatpush1.bf16.msra.mxu0 %v2185_v6  ;;  %v2204_v60 = vld [vmem:[#allocation3 + $0x2b8] ss:$0 sps:$4 sm:$0xff]   ;;  %v2209_v6 = vld [vmem:[#allocation3 + $0x1f0] ss:$20 sps:$4 sm:$0xff]  }
  0x6e   : > { %1078 = vmatprep.subr.bf16.mxu0 %v2191_v9  ;;  %v2210_v9 = vld [vmem:[#allocation3 + $0xb0] ss:$20 sps:$4 sm:$0xff]  }
  0x70   : > { %1146 = vmatpush1.bf16.msra.mxu1 %v2174_v62  ;;  %v1035_v62 = vsel %vm1021_vm2, %v2204_v60, 0 }
  0x71   : > { %1147 = vmatprep.subr.bf16.mxu1 %v2182_v0  ;;  %v2206_v0 = vld [vmem:[#allocation3 + $0x60] ss:$20 sps:$4 sm:$0xff]  }
  0x74   : > { %1148 = vmatpush1.bf16.msra.mxu1 %v2180_v3  ;;  %v2219_v3 = vld [vmem:[%s2596_s5] sm:$0xff]  }
  0x75   : > { %1149 = vmatprep.subr.bf16.mxu1 %v2188_v5  ;;  %v2208_v5 = vld [vmem:[#allocation3 + $0x88] ss:$20 sps:$4 sm:$0xff]  }
  0x78   : > { %1150 = vmatpush1.bf16.msra.mxu1 %v2186_v7  ;;  %v2223_v7 = vld [vmem:[%s2596_s5 + $0x8] sm:$0xff]  }
  0x79   : > { %1160 = vmatprep.subr.bf16.mxu1 %v2194_v10  ;;  %v2211_v10 = vld [vmem:[#allocation3 + $0x218] ss:$20 sps:$4 sm:$0xff]  }
 0x106   : > { %v368_v18 = vpop.f32.mrb[0].mxu1 }
 0x107   : > { %v369_v19 = vadd.f32 %v368_v18, %v302_v16  ;;  %v370_v20 = vpop.f32.mrb[1].mxu1  ;;  %v2213_v16 = vld [vmem:[#allocation3 + $0x240] ss:$20 sps:$4 sm:$0xff]   ;;  %v2215_v18 = vld [vmem:[#allocation3 + $0x268] ss:$20 sps:$4 sm:$0xff]  }
 0x108   : > { %v371_v22 = vadd.f32 %v370_v20, %v306_v17  ;;  %v372_v23 = vpop.f32.mrb[2].mxu1  ;;  %v2214_v17 = vld [vmem:[#allocation3 + $0x100] ss:$20 sps:$4 sm:$0xff]  }
 0x109   : > { %v415_v24 = vmul.f32 0.5, %v369_v19  ;;  %v373_v25 = vpop.f32.mrb[3].mxu1  ;;  %v2216_v19 = vld [vmem:[#allocation3 + $0x128] ss:$20 sps:$4 sm:$0xff]  }
 0x10a   : > { %v416_v26 = vmul.f32 0.5, %v371_v22  ;;  %v2218_v20 = vld [vmem:[%s2596_s5 + $0xc0] sm:$0xff]   ;;  %v2222_v23 = vld [vmem:[%s2596_s5 + $0xc8] sm:$0xff]   ;;  %v2225_v25 = vld [vmem:[%s2596_s5 + $0x50] sm:$0xff]  }
 0x10b   : > { %2252 = vtanh.f32 %v415_v24  ;;  %v2220_v22 = vld [vmem:[%s2596_s5 + $0x80] sm:$0xff]   ;;  %v2224_v24 = vld [vmem:[%s2596_s5 + $0x88] sm:$0xff]  }
 0x10c   : > { %2254 = vtanh.f32 %v416_v26  ;;  %v2226_v26 = vld [vmem:[%s2596_s5 + $0xd0] sm:$0xff]  }
 0x10e   : > { %v409_v28 = vpop.f32.mrb[4].mxu1 }
 0x10f   : > { %v410_v29 = vadd.f32 %v409_v28, %v310_v27  ;;  %v2032_v30 = vpop.f32.mrb[5].mxu1  ;;  %v2227_v27 = vld [vmem:[%s2596_s5 + $0x10] sm:$0xff]  }
 0x110   : > { %v412_v31 = vpop.f32.mrb[6].mxu1  ;;  %v2228_v28 = vld [vmem:[%s2596_s5 + $0x90] sm:$0xff]   ;;  %v2230_v30 = vld [vmem:[%s2596_s5 + $0xd8] sm:$0xff]  }
 0x111   : > { %v417_v32 = vmul.f32 0.5, %v410_v29  ;;  %v2033_v33 = vpop.f32.mrb[7].mxu1  ;;  %v2229_v29 = vld [vmem:[%s2596_s5 + $0x58] sm:$0xff]  }
 0x112   : > { %v2231_v31 = vld [vmem:[%s2596_s5 + $0x18] sm:$0xff]   ;;  %v2233_v33 = vld [vmem:[%s2596_s5 + $0x60] sm:$0xff]  }
 0x113   : > { %2256 = vtanh.f32 %v417_v32  ;;  %v2232_v32 = vld [vmem:[%s2596_s5 + $0x98] sm:$0xff]  }
 0x115   : > { %v2253_v34 = vpop.eup %2252 }
 0x116   : > { %v2255_v35 = vpop.eup %2254  ;;  %v421_v36 = vadd.f32 1.0, %v2253_v34  ;;  %v2234_v34 = vld [vmem:[%s2596_s5 + $0xe0] sm:$0xff]  }
 0x117   : > { %v422_v37 = vadd.f32 1.0, %v2255_v35  ;;  %v2235_v35 = vld [vmem:[%s2596_s5 + $0x20] sm:$0xff]  }
 0x118   : > { %v424_v38 = vmul.f32 0.5, %v421_v36  ;;  %v2236_v36 = vld [vmem:[%s2596_s5 + $0xa0] sm:$0xff]  }
 0x119   : > { %v425_v40 = vmul.f32 0.5, %v422_v37  ;;  %v2237_v37 = vld [vmem:[%s2596_s5 + $0x68] sm:$0xff]  }
 0x11a   : > { %v2443_v46 = vpack.c.bf16 %v424_v38, %v424_v38  ;;  %v2238_v38 = vld [vmem:[%s2596_s5 + $0xe8] sm:$0xff]  }
 0x11b   : > { %v428_v42 = vpack.c.bf16 %v425_v40, %v425_v40  ;;  %v2240_v40 = vld [vmem:[%s2596_s5 + $0xa8] sm:$0xff]  }
 0x11d   : > { %v2257_v50 = vpop.eup %2256  ;;  %1069 = vmatprep.mubr.bf16.mxu0 %v428_v42  ;;  %1151 = vmatprep.mubr.bf16.mxu1 %v428_v42 }
 0x11e   : > { %v423_v51 = vadd.f32 1.0, %v2257_v50  ;;  %1070 = vmatmul.mubr.bf16.vlgmr.msra.gmra.mrb[0].mxu0 %v2443_v46  ;;  %1152 = vmatmul.mubr.bf16.vlgmr.msra.gmra.mrb[8].mxu1 %v2443_v46  ;;  %v551_v50 = vsub.s32 3, %v2429_v12 }
 0x11f   : > { %1079 = vmatpush1.bf16.msra.mxu0 %v2189_v43  ;;  %1161 = vmatpush1.bf16.msra.mxu1 %v2192_v44  ;;  %v2243_v43 = vld [vmem:[%s2596_s5 + $0x30] sm:$0xff]  }
 0x120   : > { %1909 = vmatprep.subr.msk.bf16.mxu0 %vm1021_vm2, %v1905_v45  ;;  %1911 = vmatprep.subr.msk.bf16.mxu1 %vm1021_vm2, %v1907_v48  ;;  %v426_v55 = vmul.f32 0.5, %v423_v51  ;;  %v2244_v44 = vld [vmem:[%s2596_s5 + $0xb0] sm:$0xff]   ;;  %v2245_v45 = vld [vmem:[%s2596_s5 + $0x78] sm:$0xff]   ;;  %v540_v51 = vrot.slane %v535_v49, %v301_v13 }
 0x121   : > { %1110 = vmatprep.mubr.bf16.mxu0 %v2313_v1  ;;  %1192 = vmatprep.mubr.bf16.mxu1 %v2313_v1  ;;  %v2205_v1 = vld [vmem:[#allocation3 + $0x1a0] ss:$20 sps:$4 sm:$0xff]  }
 0x122   : > { %v429_v56 = vpack.c.bf16 %v426_v55, %v426_v55  ;;  %v2248_v48 = vld [vmem:[%s2596_s5 + $0xb8] sm:$0xff]  }
 0x123   : > { %1081 = vmatpush1.bf16.msra.mxu0 %v1023_v52  ;;  %1163 = vmatpush1.bf16.msra.mxu1 %v1029_v53  ;;  %v548_v52 = vrot.slane %v535_v49, %v309_v21  ;;  %v544_v53 = vrot.slane %v535_v49, %v305_v15 }
 0x124   : > { %1955 = vmatprep.subr.bf16.mxu0 %v2199_v54  ;;  %2034 = vmatprep.subr.bf16.mxu1 %v2314_v8  ;;  %v552_v54 = vrot.slane %v535_v49, %v551_v50 }
 0x12a   : > { %1910 = vmatmul.mubr.msk.bf16.vlgmr.msra.gmra.mrb[0].mxu0 %vm1017_vm3, %v429_v56  ;;  %1912 = vmatmul.mubr.msk.bf16.vlgmr.msra.gmra.mrb[8].mxu1 %vm1017_vm3, %v429_v56 }
 0x12b   : > { %1956 = vmatpush3.bf16.msra.mxu0 %v2200_v57  ;;  %1233 = vmatprep.mubr.bf16.mxu0 %v428_v42  ;;  %v2242_v42 = vld [vmem:[%s2596_s5 + $0xf0] sm:$0xff]  }
 0x12c   : > { %2035 = vmatpush3.bf16.msra.mxu1 %v2201_v58  ;;  %1957 = vmatprep.subr.bf16.mxu0 %v2202_v59 }
 0x12d   : > { %2036 = vmatprep.subr.bf16.mxu1 %v2314_v8  ;;  %2038 = vmatprep.mubr.msk.bf16.mxu1 %vm2315_vm1, %v2314_v8 }
 0x12f   : > { %1958 = vmatpush3.bf16.msra.mxu0 %v2203_v61 }
 0x130   : > { %2037 = vmatpush3.bf16.msra.mxu1 %v1035_v62  ;;  %1959 = vmatprep.subr.bf16.mxu0 %v2205_v1 }
 0x131   : > { %1980 = vmatprep.subr.bf16.mxu1 %v2217_v63 }
 0x133   : > { %1960 = vmatpush3.bf16.msra.mxu0 %v2206_v0  ;;  %2039 = vmatmul.mubr.msk.bf16.vlgmr.msra.gmra.mrb[12].mxu1 %vm1017_vm3, %v429_v56 }
 0x134   : > { %1961 = vmatprep.subr.bf16.mxu0 %v2207_v2  ;;  %1981 = vmatpush3.bf16.msra.mxu1 %v2219_v3 }
 0x135   : > { %1982 = vmatprep.subr.bf16.mxu1 %v2221_v4 }
 0x137   : > { %1962 = vmatpush3.bf16.msra.mxu0 %v2208_v5 }
 0x138   : > { %1963 = vmatprep.subr.bf16.mxu0 %v2209_v6  ;;  %1983 = vmatpush3.bf16.msra.mxu1 %v2223_v7 }
 0x139   : > { %1984 = vmatprep.subr.bf16.mxu1 %v2225_v25 }
 0x13b   : > { %1964 = vmatpush3.bf16.msra.mxu0 %v2210_v9 }
 0x13c   : > { %1965 = vmatprep.subr.bf16.mxu0 %v2211_v10  ;;  %1985 = vmatpush3.bf16.msra.mxu1 %v2227_v27  ;;  %v2249_v27 = vld [vmem:[%s2596_s5 + $0x100] sm:$0xff]  }
 0x13d   : > { %1986 = vmatprep.subr.bf16.mxu1 %v2229_v29 }
 0x13f   : > { %1966 = vmatpush3.bf16.msra.mxu0 %v2212_v14 }
 0x140   : > { %1967 = vmatprep.subr.bf16.mxu0 %v2213_v16  ;;  %1987 = vmatpush3.bf16.msra.mxu1 %v2231_v31  ;;  %v2250_v31 = vld [vmem:[%s2596_s5 + $0x108] sm:$0xff]  }
 0x141   : > { %1988 = vmatprep.subr.bf16.mxu1 %v2233_v33  ;;  %v2251_v33 = vld [vmem:[%s2596_s5 + $0x110] sm:$0xff]  }
 0x143   : > { %1968 = vmatpush3.bf16.msra.mxu0 %v2214_v17 }
 0x144   : > { %1969 = vmatprep.subr.bf16.mxu0 %v2215_v18  ;;  %1989 = vmatpush3.bf16.msra.mxu1 %v2235_v35 }
 0x145   : > { %1990 = vmatprep.subr.bf16.mxu1 %v2237_v37 }
 0x147   : > { %1970 = vmatpush3.bf16.msra.mxu0 %v2216_v19 }
 0x148   : > { %2002 = vmatprep.subr.bf16.mxu0 %v2218_v20  ;;  %1991 = vmatpush3.bf16.msra.mxu1 %v2239_v39 }
 0x149   : > { %1992 = vmatprep.subr.bf16.mxu1 %v2241_v41 }
 0x14a   : > { %1234 = vmatmul.mubr.bf16.vlgmr.msra.gmra.mrb[4].mxu0 %v2443_v46  ;;  %v2246_v46 = vld [vmem:[%s2596_s5 + $0xf8] sm:$0xff]  }
 0x14b   : > { %2003 = vmatpush3.bf16.msra.mxu0 %v2220_v22 }
 0x14c   : > { %2004 = vmatprep.subr.bf16.mxu0 %v2222_v23  ;;  %1993 = vmatpush3.bf16.msra.mxu1 %v2243_v43 }
 0x14d   : > { %1994 = vmatprep.subr.bf16.mxu1 %v2245_v45 }
 0x14f   : > { %2005 = vmatpush3.bf16.msra.mxu0 %v2224_v24 }
 0x150   : > { %2006 = vmatprep.subr.bf16.mxu0 %v2226_v26  ;;  %1995 = vmatpush3.bf16.msra.mxu1 %v2247_v47 }
 0x151   : > { %2042 = vmatprep.subr.bf16.mxu1 %v2314_v8 }
 0x153   : > { %2007 = vmatpush3.bf16.msra.mxu0 %v2228_v28 }
 0x154   : > { %2008 = vmatprep.subr.bf16.mxu0 %v2230_v30 }
 0x157   : > { %2009 = vmatpush3.bf16.msra.mxu0 %v2232_v32  ;;  %v555_v32 = vsub.s32 4, %v2429_v12 }
 0x158   : > { %2010 = vmatprep.subr.bf16.mxu0 %v2234_v34 }
 0x159   : > { %v556_v35 = vrot.slane %v535_v49, %v555_v32 }
 0x15b   : > { %2011 = vmatpush3.bf16.msra.mxu0 %v2236_v36 }
 0x15c   : > { %2012 = vmatprep.subr.bf16.mxu0 %v2238_v38 }
 0x15f   : > { %2013 = vmatpush3.bf16.msra.mxu0 %v2240_v40 }
 0x160   : > { %2014 = vmatprep.subr.bf16.mxu0 %v2242_v42 }
 0x163   : > { %2015 = vmatpush3.bf16.msra.mxu0 %v2244_v44 }
 0x164   : > { %2016 = vmatprep.subr.bf16.mxu0 %v2246_v46 }
 0x167   : > { %2017 = vmatpush3.bf16.msra.mxu0 %v2248_v48 }
 0x1fd   : > { %v1112_v55 = vpop.f32.mrb[0].mxu0  ;;  %v1194_v56 = vpop.f32.mrb[8].mxu1 }
 0x1fe   : > { %v2052_v57 = vadd.f32 %v1112_v55, %v540_v51  ;;  %v2054_v58 = vadd.f32 %v1194_v56, %v548_v52  ;;  %v1114_v59 = vpop.f32.mrb[1].mxu0  ;;  %v1196_v60 = vpop.f32.mrb[9].mxu1 }
 0x1ff   : > { %v2053_v61 = vadd.f32 %v1114_v59, %v544_v53  ;;  %v2055_v1 = vadd.f32 %v1196_v60, %v552_v54  ;;  %v1116_v62 = vpop.f32.mrb[2].mxu0  ;;  %v1198_v63 = vpop.f32.mrb[10].mxu1 }
 0x200   : > { %v1281_v0 = vmul.f32 0.5, %v2052_v57  ;;  %v1283_v2 = vmul.f32 0.5, %v2054_v58  ;;  %v1117_v13 = vpop.f32.mrb[3].mxu0  ;;  %v1199_v3 = vpop.f32.mrb[11].mxu1 }
 0x201   : > { %v1282_v4 = vmul.f32 0.5, %v2053_v61  ;;  %v1284_v21 = vmul.f32 0.5, %v2055_v1 }
 0x202   : > { %2258 = vtanh.f32 %v1281_v0 }
 0x203   : > { %2260 = vtanh.f32 %v1283_v2 }
 0x204   : > { %2262 = vtanh.f32 %v1282_v4 }
 0x205   : > { %2264 = vtanh.f32 %v1284_v21  ;;  %v1724_v21 = vand.u32 127, %v299_v11 }
 0x206   : > { %v1275_v15 = vpop.f32.mrb[12].mxu1 }
 0x207   : > { %v2040_v5 = vpop.f32.mrb[13].mxu1  ;;  %vm1725_vm5 = vcmp.eq.s32.totalorder %v1724_v21, 0 }
 0x208   : > { %v1278_v6 = vpop.f32.mrb[14].mxu1 }
 0x209   : > { %v2041_v7 = vpop.f32.mrb[15].mxu1 }
 0x20c   : > { %v2259_v9 = vpop.eup %2258 }
 0x20d   : > { %v2261_v10 = vpop.eup %2260  ;;  %v1291_v14 = vadd.f32 1.0, %v2259_v9 }
 0x20e   : > { %v2263_v16 = vpop.eup %2262  ;;  %v1293_v17 = vadd.f32 1.0, %v2261_v10 }
 0x20f   : > { %v2265_v18 = vpop.eup %2264  ;;  %v1292_v19 = vadd.f32 1.0, %v2263_v16  ;;  %v1296_v20 = vmul.f32 0.5, %v1291_v14 }
 0x210   : > { %v1294_v22 = vadd.f32 1.0, %v2265_v18  ;;  %v1298_v23 = vmul.f32 0.5, %v1293_v17 }
 0x211   : > { %v1297_v24 = vmul.f32 0.5, %v1292_v19  ;;  %v1301_v28 = vpack.c.bf16 %v1296_v20, %v1296_v20 }
 0x212   : > { %v1299_v25 = vmul.f32 0.5, %v1294_v22  ;;  %v1303_v30 = vpack.c.bf16 %v1298_v23, %v1298_v23 }
 0x213   : > { %v1302_v26 = vpack.c.bf16 %v1297_v24, %v1297_v24 }
 0x214   : > { %v1304_v29 = vpack.c.bf16 %v1299_v25, %v1299_v25 }
 0x215   : > { %1629 = vmatprep.mubr.bf16.mxu1 %v1302_v26 }
 0x216   : > { %1669 = vmatprep.mubr.bf16.mxu0 %v1304_v29  ;;  %1630 = vmatmul.mubr.bf16.vlgmr.msra.gmra.mrb[16].mxu1 %v1301_v28 }
 0x217   : > { %1670 = vmatmul.mubr.bf16.vlgmr.msra.gmra.mrb[8].mxu0 %v1303_v30  ;;  %2043 = vmatpush3.bf16.msra.mxu1 %v2249_v27 }
 0x218   : > { %2044 = vmatprep.subr.bf16.mxu1 %v2314_v8  ;;  %2048 = vmatprep.mubr.msk.bf16.mxu1 %vm2315_vm1, %v2314_v8 }
 0x21b   : > { %2045 = vmatpush3.bf16.msra.mxu1 %v2250_v31 }
 0x21c   : > { %2046 = vmatprep.subr.bf16.mxu1 %v2314_v8  ;;  %v1914_v8 = vld [vmem:[#allocation2] ss:$0 sm:$0xff] }
 0x21d   : > { %v1971_v34 = vpop.f32.mrb[4].mxu0 }
 0x21e   : > { %v1972_v36 = vpop.f32.mrb[5].mxu0 }
 0x21f   : > { %v1973_v37 = vadd.f32 %v1972_v36, %v1971_v34  ;;  %v1974_v38 = vpop.f32.mrb[6].mxu0  ;;  %2047 = vmatpush3.bf16.msra.mxu1 %v2251_v33 }
 0x220   : > { %v1975_v39 = vpop.f32.mrb[7].mxu0 }
 0x221   : > { %v1236_v40 = vadd.f32 %v1973_v37, %v556_v35 }
 0x223   : > { %v1276_v41 = vadd.f32 %v1275_v15, %v1236_v40 }
 0x225   : > { %v1285_v42 = vmul.f32 0.5, %v1276_v41 }
 0x227   : > { %2266 = vtanh.f32 %v1285_v42 }
 0x231   : > { %v2267_v43 = vpop.eup %2266 }
 0x232   : > { %v1295_v12 = vadd.f32 1.0, %v2267_v43 }
 0x234   : > { %v1300_v44 = vmul.f32 0.5, %v1295_v12 }
 0x236   : > { %v1305_v45 = vpack.c.bf16 %v1300_v44, %v1300_v44 }
 0x238   : > { %2049 = vmatmul.mubr.msk.bf16.vlgmr.msra.gmra.mrb[20].mxu1 %vm1593_vm4, %v1305_v45 }
 0x2e9   : > { %v1996_v46 = vpop.f32.mrb[16].mxu1 }
 0x2ea   : > { %v2018_v47 = vpop.f32.mrb[8].mxu0  ;;  %v1997_v48 = vpop.f32.mrb[17].mxu1 }
 0x2eb   : > { %v1998_v49 = vadd.f32 %v1997_v48, %v1996_v46  ;;  %v2019_v50 = vpop.f32.mrb[9].mxu0  ;;  %v1999_v51 = vpop.f32.mrb[18].mxu1 }
 0x2ec   : > { %v2020_v52 = vadd.f32 %v2019_v50, %v2018_v47  ;;  %v2021_v53 = vpop.f32.mrb[10].mxu0  ;;  %v2000_v54 = vpop.f32.mrb[19].mxu1 }
 0x2ed   : > { %v1632_v55 = vadd.f32 %v1998_v49, %v1914_v8  ;;  %v2022_v56 = vpop.f32.mrb[11].mxu0 }
 0x2ef   : > { %v1672_v57 = vadd.f32 %v2020_v52, %v1632_v55 }
 0x30b   : > { %v1711_v58 = vpop.f32.mrb[20].mxu1 }
 0x30c   : > { %v1712_v59 = vadd.f32 %v1711_v58, %v1672_v57  ;;  %v2050_v60 = vpop.f32.mrb[21].mxu1 }
 0x30d   : > { %v1714_v61 = vpop.f32.mrb[22].mxu1 }
 0x30e   : > { %v1717_v1 = vmul.f32 0.5, %v1712_v59  ;;  %v2051_v62 = vpop.f32.mrb[23].mxu1 }
 0x310   : > { %2268 = vtanh.f32 %v1717_v1 }
 0x31a   : > { %v2269_v63 = vpop.eup %2268 }
 0x31b   : > { %v1719_v0 = vadd.f32 1.0, %v2269_v63 }
 0x31d   : > { %v1720_v2 = vmul.f32 0.5, %v1719_v0 }
 0x31f   : > { %v1721_v13 = vmax.f32 %v1720_v2, 0.0 }
 0x321   : > { %v1722_v3 = vmin.f32 %v1721_v13, 1.0 }
 0x323   : > { %v1726_v4 = vsub.f32 1.0, %v1722_v3 }
 0x325   : > { %1729 = vperm.xlu0 %2088, %v1726_v4  }
 0x329   : > { %1734 = vperm.xlu0 %2088, %v1722_v3  }
 0x3a4   : > { %v1730_v15 = vpop.permute.xlu0 %1729 }
 0x3a8   : > { %v1735_v5 = vpop.permute.xlu0 %1734 }
 0x3a9   : > { %v1737_v6 = vsel %vm1725_vm5, %v1730_v15, %v1735_v5 }
 0x3aa   : > { %1739 = vst.msk [vmem:[%s290_s19] sm:$0xff] %vm1738_vm6, %v1737_v6 }
 0x3ab PF: > { %s20_s26 = sadd.s32 1, %s2308_s26  }
 0x3ac   : > { %p17_p3 = scmp.ge.s32.totalorder %s20_s26, 4  }
 0x3ae   :  { %19 = sbr.rel (!%p17_p3) target bundleno = 4 (0x4), region = 83 }
 0x3b5   :  { %1759 = vsyncpa [#allocation4], 1 }
 0x3b6   :  { %1761 = vsyncpa [#allocation4 + $0x1], 1 }

</bundles_post_ra>
